<compile_context>
chip_gen: v6e
topology: v6e:2x2x1
jax: 0.10.0
libtpu: 0.0.40
codegen_flags: <defaults>
</compile_context>

<pallas_src>
import functools

import jax
import jax.numpy as jnp
from jax.experimental import pallas as pl
from jax.experimental.pallas import tpu as pltpu

_MIB = 1 << 20


# --------------------------------------------------------------------------
# Kernel bodies
# --------------------------------------------------------------------------
def _make_gemm_kernel(has_bias, use_acc_scratch, cast_bf16):
    """General tiled GEMM body. Grid = (M-blocks, N-blocks, K-blocks), K last."""

    def kernel(*refs):
        if has_bias:
            x_ref, w_ref, b_ref, o_ref, *scratch = refs
        else:
            x_ref, w_ref, o_ref, *scratch = refs
            b_ref = None
        acc_ref = scratch[0] if use_acc_scratch else o_ref

        k = pl.program_id(2)

        @pl.when(k == 0)
        def _init():
            if has_bias and not use_acc_scratch:
                # f32 output: seed the k-resident output block with the bias,
                # so there is no epilogue pass at all.
                acc_ref[...] = (jnp.zeros_like(acc_ref)
                                + b_ref[...].astype(jnp.float32))
            else:
                acc_ref[...] = jnp.zeros_like(acc_ref)

        xt = x_ref[...]
        wt = w_ref[...]
        if cast_bf16:
            # VPU cast inside the kernel (hides under the MXU); avoids an
            # un-hidden full-activation cast round trip in HBM.
            xt = xt.astype(jnp.bfloat16)
            wt = wt.astype(jnp.bfloat16)
        acc_ref[...] += jnp.dot(xt, wt, preferred_element_type=jnp.float32)

        if use_acc_scratch:
            @pl.when(k == pl.num_programs(2) - 1)
            def _finalize():
                out = acc_ref[...]
                if has_bias:
                    out = out + b_ref[...].astype(jnp.float32)
                o_ref[...] = out.astype(o_ref.dtype)

    return kernel


def _make_small_m_kernel(has_bias, cast_bf16):
    """Small-M (decode-style) body: single K block, grid only over N."""

    def kernel(*refs):
        if has_bias:
            x_ref, w_ref, b_ref, o_ref = refs
        else:
            x_ref, w_ref, o_ref = refs
            b_ref = None
        xt = x_ref[...]
        wt = w_ref[...]
        if cast_bf16:
            xt = xt.astype(jnp.bfloat16)
            wt = wt.astype(jnp.bfloat16)
        acc = jnp.dot(xt, wt, preferred_element_type=jnp.float32)
        if has_bias:
            acc = acc + b_ref[...].astype(jnp.float32)
        o_ref[...] = acc.astype(o_ref.dtype)

    return kernel


# --------------------------------------------------------------------------
# Tile / VMEM selection helpers (all run at trace time on Python ints)
# --------------------------------------------------------------------------
def _round_up(a, b):
    return -(-a // b) * b


def _balanced_tile(dim, max_tile, align):
    if dim <= max_tile:
        return dim                      # full-extent block is always layout-legal
    nblocks = pl.cdiv(dim, max_tile)
    return _round_up(pl.cdiv(dim, nblocks), align)


def _vmem_caps():
    """(block budget, scoped-limit ceiling) in bytes, safe on every TPU gen."""
    cap = 64 * _MIB                     # v7x per-TensorCore physical VMEM
    try:
        cap = int(pltpu.get_tpu_info().vmem_capacity_bytes)
    except Exception:
        pass
    # TODO(synk): trust reported >64 MiB capacities (v5e/v6e: 128 MiB/core) to
    # raise the budget; clamped for now so tiles always fit v7x's 64 MiB.
    cap = min(cap, 64 * _MIB)
    return (cap * 7) // 16, (cap * 13) // 16     # ~28 MiB blocks, ~52 MiB limit


def _gemm_footprint(tm, tn, tk, xb, wb, ob, has_bias, use_scratch):
    fp = 2 * (tm * tk * xb + tk * tn * wb + tm * tn * ob)   # double-buffered
    if has_bias:
        fp += 2 * tn * 4
    if use_scratch:
        fp += tm * tn * 4
    return fp


def _pick_k_tile(K, footprint_of, budget):
    if footprint_of(K) <= budget:       # prefer a single K step when it fits
        return K, 0
    for cand in (4096, 2048, 1024, 512, 256, 128):
        if K % cand == 0 and footprint_of(cand) <= budget:
            return cand, 0
    # Awkward K: zero-pad once to a multiple of 128, then tile as large as fits.
    pad = (-K) % 128
    kp = K + pad
    for cand in (2048, 1024, 512, 256, 128):
        if kp % cand == 0 and footprint_of(cand) <= budget:
            return cand, pad
    return 128, pad


# --------------------------------------------------------------------------
# Public wrapper (MyLinear.forward)
# --------------------------------------------------------------------------
@functools.partial(jax.jit, static_argnames=("use_bf16_operands",))
def my_linear(x, weight_t, bias=None, *, use_bf16_operands=False):
    """Pallas TPU implementation of MyLinear.forward.

    x:        (*leading, inp_dim)
    weight_t: (inp_dim, out_dim)    (transpose of torch's (out, in) weight)
    bias:     (out_dim,) or None
    returns:  (*leading, out_dim), dtype of x

    use_bf16_operands: cast operand tiles to bf16 inside the kernel (f32
    accumulation preserved). ~3-8x MXU throughput on v6e/v7x at reduced
    operand precision; for the full HBM-bandwidth win also pass weight_t
    already stored in bf16 (cast once at init, not per call).
    """
    *lead, K = x.shape
    Kw, N = weight_t.shape
    assert Kw == K, (Kw, K)

    out_dtype = x.dtype
    x2 = x.reshape(-1, K)
    M = x2.shape[0]

    xb = x2.dtype.itemsize
    wb = weight_t.dtype.itemsize
    ob = jnp.dtype(out_dtype).itemsize
    has_bias = bias is not None
    cast_bf16 = bool(use_bf16_operands)
    budget, limit_ceiling = _vmem_caps()
    b2 = bias.reshape(1, N) if has_bias else None

    # ---- Small-M fast path (decode-style): W read exactly once, no K axis ----
    if M <= 128:
        cands = ([N] if N <= 1024 else []) + [c for c in (512, 256, 128) if c < N]
        tn_f = None
        for cand in cands:
            fp_f = (2 * (M * K * xb + K * cand * wb + M * cand * ob)
                    + (2 * cand * 4 if has_bias else 0))
            if fp_f <= budget:
                tn_f = cand
                break
        if tn_f is not None:
            if pl.cdiv(N, tn_f) == 1 and N >= 256:
                tn_f = _round_up(pl.cdiv(N, 2), 128)    # keep both v7x TCs busy
            in_specs = [pl.BlockSpec((M, K), lambda j: (0, 0)),
                        pl.BlockSpec((K, tn_f), lambda j: (0, j))]
            args = [x2, weight_t]
            if has_bias:
                in_specs.append(pl.BlockSpec((1, tn_f), lambda j: (0, j)))
                args.append(b2)
            y = pl.pallas_call(
                _make_small_m_kernel(has_bias, cast_bf16),
                out_shape=jax.ShapeDtypeStruct((M, N), out_dtype),
                grid_spec=pltpu.PrefetchScalarGridSpec(
                    num_scalar_prefetch=0,
                    grid=(pl.cdiv(N, tn_f),),
                    in_specs=in_specs,
                    out_specs=pl.BlockSpec((M, tn_f), lambda j: (0, j))),
                compiler_params=pltpu.CompilerParams(
                    dimension_semantics=("parallel",),
                    vmem_limit_bytes=int(min(limit_ceiling,
                                             max(32 * _MIB, fp_f + 8 * _MIB)))),
            )(*args)
            return y.reshape(*lead, N)

    # ---- General tiled path ----
    use_scratch = out_dtype != jnp.float32      # f32 out accumulates into o_ref

    tm_eff = _balanced_tile(M, 512, 8)
    tn_eff = _balanced_tile(N, 512, 128)
    if pl.cdiv(M, tm_eff) * pl.cdiv(N, tn_eff) == 1:
        # Give the 'parallel' axes >= 2 blocks total so both v7x TCs get work.
        if N >= 256:
            tn_eff = _round_up(pl.cdiv(N, 2), 128)
        elif M >= 16:
            tm_eff = _round_up(pl.cdiv(M, 2), 8)

    def _fp(tk):
        return _gemm_footprint(tm_eff, tn_eff, tk, xb, wb, ob,
                               has_bias, use_scratch)

    tk, pad_k = _pick_k_tile(K, _fp, budget)
    w_in = weight_t
    if pad_k:
        # TODO(synk): pad the weight once at init instead of per forward call.
        x2 = jnp.pad(x2, ((0, 0), (0, pad_k)))
        w_in = jnp.pad(w_in, ((0, pad_k), (0, 0)))
    kp = K + pad_k

    grid = (pl.cdiv(M, tm_eff), pl.cdiv(N, tn_eff), kp // tk)
    in_specs = [pl.BlockSpec((tm_eff, tk), lambda i, j, k: (i, k)),
                pl.BlockSpec((tk, tn_eff), lambda i, j, k: (k, j))]
    args = [x2, w_in]
    if has_bias:
        in_specs.append(pl.BlockSpec((1, tn_eff), lambda i, j, k: (0, j)))
        args.append(b2)
    scratch = [pltpu.VMEM((tm_eff, tn_eff), jnp.float32)] if use_scratch else []

    y = pl.pallas_call(
        _make_gemm_kernel(has_bias, use_scratch, cast_bf16),
        out_shape=jax.ShapeDtypeStruct((M, N), out_dtype),
        grid_spec=pltpu.PrefetchScalarGridSpec(
            num_scalar_prefetch=0,
            grid=grid,
            in_specs=in_specs,
            out_specs=pl.BlockSpec((tm_eff, tn_eff), lambda i, j, k: (i, j)),
            scratch_shapes=scratch),
        compiler_params=pltpu.CompilerParams(
            dimension_semantics=("parallel", "parallel", "arbitrary"),
            vmem_limit_bytes=int(min(limit_ceiling,
                                     max(32 * _MIB, _fp(tk) + 8 * _MIB)))),
    )(*args)
    return y.reshape(*lead, N)


# --------------------------------------------------------------------------
if __name__ == "__main__":
    key = jax.random.PRNGKey(0)
    kx, kw, kb, kx2, kw2, kb2 = jax.random.split(key, 6)

    # ---- Check 1: module-scale shapes (batch=2, seq=8, inp=32, out=64) ----
    inp_dim, out_dim = 32, 64
    batch, seq = 2, 8
    bound = 1.0 / float(inp_dim) ** 0.5
    # torch weight is (out_dim, inp_dim); the kernel takes its transpose.
    weight = jax.random.uniform(kw, (out_dim, inp_dim), jnp.float32, -bound, bound)
    bias = jax.random.uniform(kb, (out_dim,), jnp.float32, -bound, bound)
    x = jax.random.normal(kx, (batch, seq, inp_dim), jnp.float32)

    y = jax.block_until_ready(my_linear(x, weight.T, bias))
    y_ref = (jnp.dot(x.reshape(-1, inp_dim), weight.T,
                     precision=jax.lax.Precision.HIGHEST) + bias
             ).reshape(batch, seq, out_dim)
    assert y.shape == (batch, seq, out_dim)
    assert jnp.allclose(y, y_ref, atol=1e-4, rtol=1e-4)

    # ---- Check 1b: bias=False variant ----
    y_nb = jax.block_until_ready(my_linear(x, weight.T))
    y_nb_ref = jnp.dot(x.reshape(-1, inp_dim), weight.T,
                       precision=jax.lax.Precision.HIGHEST
                       ).reshape(batch, seq, out_dim)
    assert jnp.allclose(y_nb, y_nb_ref, atol=1e-4, rtol=1e-4)

    # ---- Check 2: general tiled path (partial M blocks, N tiling) ----
    K2, N2 = 256, 384
    lead2 = (3, 70)                      # M = 210 -> split into two M blocks
    w2 = jax.random.uniform(kw2, (N2, K2), jnp.float32, -0.05, 0.05)
    b2v = jax.random.uniform(kb2, (N2,), jnp.float32, -0.05, 0.05)
    x2v = jax.random.normal(kx2, (*lead2, K2), jnp.float32)

    y2 = jax.block_until_ready(my_linear(x2v, w2.T, b2v))
    y2_ref = (jnp.dot(x2v.reshape(-1, K2), w2.T,
                      precision=jax.lax.Precision.HIGHEST) + b2v
              ).reshape(*lead2, N2)
    assert y2.shape == (*lead2, N2)
    assert jnp.allclose(y2, y2_ref, atol=1e-4, rtol=1e-4)

    # ---- Check 3: bf16-operand fast mode (f32 accumulate), loose tolerance ----
    y3 = jax.block_until_ready(my_linear(x2v, w2.T, b2v, use_bf16_operands=True))
    assert jnp.allclose(y3, y2_ref, atol=5e-2, rtol=5e-2)

    print("KERNEL_OK")
</pallas_src>

<mosaic_0001>
module attributes {stable_mosaic.version = 11 : i64} {
  func.func @kernel(%arg0: i32, %arg1: memref<16x32xf32, #tpu.memory_space<vmem>>, %arg2: memref<32x64xf32, #tpu.memory_space<vmem>>, %arg3: memref<1x64xf32, #tpu.memory_space<vmem>>, %arg4: memref<16x64xf32, #tpu.memory_space<vmem>>) attributes {dimension_semantics = [#tpu.dimension_semantics<parallel>], iteration_bounds = array<i64: 1>, scalar_prefetch = 0 : i64, scratch_operands = 0 : i64, tpu.core_type = #tpu.core_type<tc>, window_params = [{pipeline_mode = #tpu.pipeline_mode<synchronous>, transform_indices = @transform_0, window_bounds = array<i64: 16, 32>}, {transform_indices = @transform_1, window_bounds = array<i64: 32, 64>}, {transform_indices = @transform_2, window_bounds = array<i64: 1, 64>}, {transform_indices = @transform_3, window_bounds = array<i64: 16, 64>}]} {
    %c0 = arith.constant 0 : index
    %c0_0 = arith.constant 0 : index
    %0 = vector.load %arg1[%c0, %c0_0] : memref<16x32xf32, #tpu.memory_space<vmem>>, vector<16x32xf32>
    %c0_1 = arith.constant 0 : index
    %c0_2 = arith.constant 0 : index
    %1 = vector.load %arg2[%c0_1, %c0_2] : memref<32x64xf32, #tpu.memory_space<vmem>>, vector<32x64xf32>
    %cst = arith.constant dense<0.000000e+00> : vector<16x64xf32>
    %2 = tpu.matmul %0, %1, %cst {dimension_numbers = #tpu.dot_dimension_numbers<[1], [0], [0], [1], [0, 0, 1, 1], [], []>} : vector<16x32xf32>, vector<32x64xf32>, vector<16x64xf32> -> vector<16x64xf32>
    %c0_3 = arith.constant 0 : index
    %c0_4 = arith.constant 0 : index
    %3 = vector.load %arg3[%c0_3, %c0_4] : memref<1x64xf32, #tpu.memory_space<vmem>>, vector<1x64xf32>
    %4 = vector.broadcast %3 : vector<1x64xf32> to vector<16x64xf32>
    %5 = arith.addf %2, %4 : vector<16x64xf32>
    %c0_5 = arith.constant 0 : index
    %c0_6 = arith.constant 0 : index
    %6 = vector.load %arg4[%c0_5, %c0_6] : memref<16x64xf32, #tpu.memory_space<vmem>>, vector<16x64xf32>
    tpu.vector_store %arg4[%c0_5, %c0_6], %5 {strides = array<i32>} : memref<16x64xf32, #tpu.memory_space<vmem>>, vector<16x64xf32>,
    return
  }
  func.func @transform_0(%arg0: i32) -> (i32, i32) {
    %c0_i32 = arith.constant 0 : i32
    %c0_i32_0 = arith.constant 0 : i32
    %c0_i32_1 = arith.constant 0 : i32
    return %c0_i32, %c0_i32_0 : i32, i32
  }
  func.func @transform_1(%arg0: i32) -> (i32, i32) {
    %c0_i32 = arith.constant 0 : i32
    %c0_i32_0 = arith.constant 0 : i32
    return %c0_i32, %arg0 : i32, i32
  }
  func.func @transform_2(%arg0: i32) -> (i32, i32) {
    %c0_i32 = arith.constant 0 : i32
    %c0_i32_0 = arith.constant 0 : i32
    return %c0_i32, %arg0 : i32, i32
  }
  func.func @transform_3(%arg0: i32) -> (i32, i32) {
    %c0_i32 = arith.constant 0 : i32
    %c0_i32_0 = arith.constant 0 : i32
    return %c0_i32, %arg0 : i32, i32
  }
}

</mosaic_0001>

<bundles_post_ra>
// kernel: my_linear.1
= control target key start
LH: loop header
LB: loop body
LE: loop exit
PB: predicated region body
PF: predicated region fallthrough
CT: control target
= control target key end

     0   :  { %8 = vsyncpa [#allocation3], 0  ;;  %s298_s0 = inlined_call_operand.hbm [shape: f32[16,32], index: 0, kind: input, shape index: {}]   ;;  %s299_s1 = inlined_call_operand.hbm [shape: f32[32,64], index: 1, kind: input, shape index: {}]   ;;  %s300_s2 = inlined_call_operand.vmem [shape: f32[1,64], index: 2, kind: input, shape index: {}]   ;;  %s301_s3 = inlined_call_operand.hbm [shape: f32[16,64], index: 3, kind: output, shape index: {}]  }
   0x1   :  { %9 = vsyncpa [#allocation6], 0 }
   0x2   :  { %10 = vsyncpa [#allocation4], 0  ;;  %s250_s12 = smov [#allocation2]  }
   0x3   :  { %s16_s13 = sshll.u32 %s250_s12, 4  ;;  %s17_s13 = int_to_ptr.vmem [resolvable:$true] %s16_s13 }
   0x4   :  { %s192_s14 = scalar_lea.vmem %s17_s13, 256  ;;  %p197_p1 = scmp.lt.s32.totalorder %s17_s13, %s17_s13 }
   0x5   :  { %p193_p0 = scmp.ne.s32.totalorder %s17_s13, %s192_s14  ;;  %p198_p2 = scmp.lt.s32.totalorder %s192_s14, %s192_s14 }
   0x7   :  { %p199_p3 = por %p198_p2, %p197_p1 }
   0x9   :  { %p200_p4 = pnand %p199_p3, %p193_p0 }
   0xb   :  { %203 = shalt.err (!%p200_p4)
}
   0xc   :  { %s251_s15 = smov 128   ;;  %s252_s16 = smov 8  }
   0xd   :  { %22 = dma.hbm_to_vmem [thread:$0]  %s298_s0, 256, %s17_s13, [#allocation3], %s251_s15, %s251_s15, %s252_s16  }
   0xe   :  { %s253_s19 = smov [#allocation5]  }
   0xf   :  { %s28_s20 = sshll.u32 %s253_s19, 4  ;;  %s29_s20 = int_to_ptr.vmem [resolvable:$true] %s28_s20 }
  0x10   :  { %s212_s21 = scalar_lea.vmem %s29_s20, 512  ;;  %p217_p6 = scmp.lt.s32.totalorder %s29_s20, %s29_s20 }
  0x11   :  { %p213_p5 = scmp.ne.s32.totalorder %s29_s20, %s212_s21  ;;  %p218_p7 = scmp.lt.s32.totalorder %s212_s21, %s212_s21 }
  0x13   :  { %p219_p8 = por %p218_p7, %p217_p6 }
  0x15   :  { %p220_p9 = pnand %p219_p8, %p213_p5 }
  0x17   :  { %223 = shalt.err (!%p220_p9)
}
  0x18   :  { %34 = dma.hbm_to_vmem [thread:$0]  %s299_s1, 512, %s29_s20, [#allocation6], %s251_s15, %s251_s15, %s252_s16  }
  0x19   :  { %244 = dma.done.wait [#allocation3], 256  }
  0x1a   :  { %245 = vsyncadd [#allocation3], 4294967040 }
  0x1b   :  { %246 = dma.done.wait [#allocation6], 512  }
  0x1c   :  { %247 = vsyncadd [#allocation6], 4294966784  ;;  %vm56_vm0 = vcmask 261120   ;;  %v48_v0 = vld [vmem:[#allocation5 + $0x18] sm:$0xff]  ;;  %v47_v1 = vld [vmem:[#allocation5 + $0x10] sm:$0xff]  ;;  %vm138_vm1 = vcmask 523264  }
  0x1d   :  { %168 = vmatprep.subr.mxu0 %v48_v0  ;;  %v43_v2 = vld [vmem:[#allocation2] sm:$0xff]  ;;  %v46_v3 = vld [vmem:[#allocation5 + $0x8] sm:$0xff]  ;;  %v45_v4 = vld [vmem:[#allocation5] sm:$0xff]  ;;  %s254_s24 = smov [#allocation7]  }
  0x1e   :  { %169 = vmatpush3.msra.mxu0 %v48_v0  ;;  %176 = vmatprep.mubr.msk.f32.mxu0 %vm56_vm0, %v43_v2  ;;  %v44_v5 = vld [vmem:[#allocation2 + $0x8] sm:$0xff]  ;;  %v159_v6 = vld [vmem:[%s300_s2] ss:$0 sm:$0xff]  ;;  %s146_s25 = sshll.u32 %s254_s24, 4  ;;  %s147_s25 = int_to_ptr.vmem [resolvable:$true] %s146_s25 }
  0x1f   :  { %170 = vmatprep.subr.mxu0 %v47_v1  ;;  %s224_s26 = scalar_lea.vmem %s147_s25, 256  ;;  %p229_p11 = scmp.lt.s32.totalorder %s147_s25, %s147_s25 }
  0x20   :  { %171 = vmatpush3.msra.mxu0 %v47_v1  ;;  %p225_p10 = scmp.ne.s32.totalorder %s147_s25, %s224_s26  ;;  %p230_p12 = scmp.lt.s32.totalorder %s224_s26, %s224_s26 }
  0x21   :  { %172 = vmatprep.subr.mxu0 %v46_v3 }
  0x22   :  { %173 = vmatpush3.msra.mxu0 %v46_v3  ;;  %p231_p13 = por %p230_p12, %p229_p11 }
  0x23   :  { %174 = vmatprep.subr.mxu0 %v45_v4 }
  0x24   :  { %175 = vmatpush3.msra.mxu0 %v45_v4  ;;  %p232_p0 = pnand %p231_p13, %p225_p10 }
  0x25   :  { %177 = vmatmul.mubr.msk.f32.vlgmr.msra.gmra.mxu0 %vm56_vm0, %v44_v5 }
  0xe5   :  { %v178_v7 = vpop.f32.mrf.mxu0 }
  0xe6   :  { %v135_v8 = vadd.f32 %v178_v7, %v159_v6 }
  0xe7   :  { %v129_v9 = vpop.f32.mrf.mxu0 }
  0xe8   :  { %v130_v10 = vadd.f32 %v159_v6, %v129_v9  ;;  %140 = vst.msk [vmem:[#allocation7 + $0x8] sm:$0xff] %vm138_vm1, %v135_v8 }
  0xea   :  { %139 = vst.msk [vmem:[#allocation7] sm:$0xff] %vm138_vm1, %v130_v10 }
  0xeb   :  { %235 = shalt.err (!%p232_p0)
}
  0xec   :  { %152 = dma.vmem_to_hbm [thread:$0]  %s147_s25, 256, %s301_s3, [#allocation4], %s251_s15, %s251_s15, %s252_s16  }
  0xed   :  { %248 = dma.done.wait [#allocation4], 256  }
  0xee   :  { %249 = vsyncadd [#allocation4], 4294967040 }
  0xef   :  { %156 = vsyncpa [#allocation3], 1 }
  0xf0   :  { %157 = vsyncpa [#allocation6], 1 }
  0xf1   :  { %158 = vsyncpa [#allocation4], 1 }

</bundles_post_ra>
